<compile_context>
chip_gen: v7x
topology: tpu7x:2x2x1
jax: 0.10.0
libtpu: 0.0.40
codegen_flags: <defaults>
</compile_context>

<pallas_src>
import functools

import jax
import jax.numpy as jnp
from jax.experimental import pallas as pl
from jax.experimental.pallas import tpu as pltpu

_I32_MIN = -(2 ** 31)
_I32_MAX = 2 ** 31 - 1
_NAN_KEY = 0x7FC00000  # canonical positive quiet-NaN bits: ranks above +inf (torch-like)


def _cdiv(a, b):
    return (a + b - 1) // b


def _vmem_capacity_bytes():
    """Physical VMEM per core; conservative fallback if the query is unavailable."""
    try:
        cap = getattr(pltpu.get_tpu_info(), "vmem_capacity_bytes", None)
        if cap:
            return int(cap)
    except Exception:
        pass
    return 64 * 1024 * 1024  # v7x per-core size == safe everywhere


def _greedy_kernel(x_ref, out_ref, key_sc, idx_sc, *, vocab, packed_idx):
    """Tiled argmax over the last (vocab) axis.

    grid = (row_tiles, vocab_tiles); vocab is the trailing "arbitrary" reduction
    axis.  key_sc / idx_sc carry the running (monotone int32 value-key, argmax
    index) across vocab tiles; ties resolve to the first occurrence.
    """
    j = pl.program_id(1)
    tile_v = x_ref.shape[-1]

    @pl.when(j == 0)
    def _():
        key_sc[...] = jnp.full(key_sc.shape, _I32_MIN, jnp.int32)
        idx_sc[...] = jnp.zeros(idx_sc.shape, jnp.int32)

    # Stream the native dtype from HBM (bf16 halves HBM bytes); the f32 upcast is
    # exact for bf16/f16 and only exists to grab the bit pattern — everything
    # after this point is integer VPU work, no second float pass.
    xf = x_ref[...].astype(jnp.float32)
    bits = pltpu.bitcast(xf, jnp.int32)
    # torch.topk ranks NaN above everything (incl. +inf); canonicalize every NaN
    # payload (positive and negative) to one key just above +inf's key.
    bits = jnp.where(xf != xf, jnp.int32(_NAN_KEY), bits)
    # Monotone map: int32 compare order == float compare order.
    key = jnp.where(bits < 0, jnp.int32(_I32_MIN) - bits, bits)

    cols = jax.lax.broadcasted_iota(jnp.int32, key.shape, 1)

    # Ragged last vocab tile: Pallas does not zero out-of-bounds block reads, so
    # mask the garbage lanes to the smallest possible key BEFORE any reduction.
    # (Only traced when vocab % tile_v != 0; tv is chosen so this is often exact.)
    ragged = (vocab % tile_v) != 0

    if packed_idx:
        # bf16 keys have zero low 16 bits, so pack key | reversed-local-column
        # into one int32 and do a SINGLE max reduction: it yields the max value
        # and, on value ties, the largest reversed column == smallest column.
        packed = key + (jnp.int32(tile_v - 1) - cols)
        if ragged:
            rem = jnp.int32(vocab) - j * tile_v
            packed = jnp.where(cols < rem, packed, jnp.int32(_I32_MIN))
        tile_best = jnp.max(packed, axis=-1, keepdims=True)              # (TB, 1)
        rev = tile_best & jnp.int32(0xFFFF)
        tile_key = tile_best - rev                                       # value-only key
        tile_idx = (jnp.int32(tile_v - 1) - rev) + j * tile_v            # global index
    else:
        # Exact two-pass for f32/f16 (the 32-bit key can't share bits with the column).
        if ragged:
            rem = jnp.int32(vocab) - j * tile_v
            key = jnp.where(cols < rem, key, jnp.int32(_I32_MIN))
        tile_key = jnp.max(key, axis=-1, keepdims=True)                  # (TB, 1)
        cand = jnp.where(key == tile_key, cols, jnp.int32(_I32_MAX))
        tile_idx = jnp.min(cand, axis=-1, keepdims=True) + j * tile_v    # first occurrence

    better = tile_key > key_sc[...]          # strict >: earliest vocab tile wins ties
    idx_sc[...] = jnp.where(better, tile_idx, idx_sc[...])
    key_sc[...] = jnp.where(better, tile_key, key_sc[...])

    @pl.when(j == pl.num_programs(1) - 1)
    def _():
        # (tb, 1) writeback kept: a lane-dense (1, tb) block would need an
        # in-kernel (tb,1)->(1,tb) relayout; this is one tiny DMA per row tile.
        out_ref[...] = idx_sc[...]


def greedy_head(m_logits, *, max_lane_tile=None):
    """Equivalent of GreedyHead.forward: argmax over the last dim with a trailing
    size-1 dim (torch.topk(m_logits.float(), 1)[1]); returns int32 indices.

    Pass logits in their native dtype (bf16 halves HBM traffic); the kernel does
    all value comparisons via an exact monotone integer key internally.
    """
    orig_shape = m_logits.shape
    vocab = int(orig_shape[-1])
    if m_logits.dtype not in (jnp.float32, jnp.bfloat16, jnp.float16):
        m_logits = m_logits.astype(jnp.float32)          # torch's .float() semantics
    x2d = m_logits.reshape(-1, vocab)
    rows = int(x2d.shape[0])
    itemsize = jnp.dtype(x2d.dtype).itemsize

    # ---- row tile --------------------------------------------------------
    if rows <= 8:
        tb = rows                        # full extent satisfies the (8,128) rule
    elif rows <= 512:
        # >= 2 row tiles so the "parallel" row axis can shard across v7x's 2 TCs.
        tb = min(256, ((rows + 1) // 2 + 7) // 8 * 8)
    else:
        tb = 256
    n_rt = _cdiv(rows, tb)

    # ---- vocab tile (generation-aware VMEM sizing, no padding) ------------
    vmem_cap = _vmem_capacity_bytes()
    vmem_limit = min(vmem_cap // 2, 64 * 1024 * 1024)    # ~64 MiB v5e/v6e, 32 MiB v7x
    usable = max(4 * 1024 * 1024, vmem_limit - 2 * 1024 * 1024)
    # Double-buffered native-dtype input + headroom for ~4 f32/int32 elementwise
    # intermediates the kernel body creates per element.
    bytes_per_elem = 2 * itemsize + 16
    max_tv = max(128, (usable // bytes_per_elem // max(tb, 1)) // 128 * 128)
    packed_idx = x2d.dtype == jnp.bfloat16
    if packed_idx:
        max_tv = min(max_tv, 65536)      # reversed local column must fit in 16 bits
    if max_lane_tile is not None:        # test hook: force the multi-tile path
        max_tv = max(128, min(max_tv, int(max_lane_tile)))

    if vocab <= max_tv:
        tv, n_vt = vocab, 1              # full extent: no 128-divisibility needed
    else:
        n_vt = _cdiv(vocab, max_tv)
        tv = _cdiv(_cdiv(vocab, n_vt), 128) * 128        # balanced, lane-aligned
        n_vt = _cdiv(vocab, tv)          # last tile may be ragged (masked in-kernel)

    grid = (n_rt, n_vt)
    kernel = functools.partial(_greedy_kernel, vocab=vocab, packed_idx=packed_idx)

    out = pl.pallas_call(
        kernel,
        out_shape=jax.ShapeDtypeStruct((rows, 1), jnp.int32),
        grid_spec=pltpu.PrefetchScalarGridSpec(
            num_scalar_prefetch=0,
            grid=grid,
            in_specs=[pl.BlockSpec((tb, tv), lambda i, j: (i, j))],
            out_specs=pl.BlockSpec((tb, 1), lambda i, j: (i, 0)),
            scratch_shapes=[
                pltpu.VMEM((tb, 1), jnp.int32),   # running value key
                pltpu.VMEM((tb, 1), jnp.int32),   # running argmax index
            ],
        ),
        compiler_params=pltpu.CompilerParams(
            dimension_semantics=("parallel", "arbitrary"),
            vmem_limit_bytes=vmem_limit,
        ),
        cost_estimate=pl.CostEstimate(
            flops=2 * rows * vocab,
            transcendentals=0,
            bytes_accessed=rows * vocab * itemsize + rows * 4,
        ),
    )(x2d)

    return out.reshape(orig_shape[:-1] + (1,))


if __name__ == "__main__":
    key = jax.random.PRNGKey(0)
    k1, k2, k3, k4, k5 = jax.random.split(key, 5)

    # 1) f32 decode-ish shape: exact two-pass, single full-vocab tile.
    x1 = jax.random.normal(k1, (2, 1024), dtype=jnp.float32)
    t1 = jax.block_until_ready(greedy_head(x1))
    r1 = jnp.argmax(x1, axis=-1, keepdims=True).astype(jnp.int32)
    assert t1.shape == (2, 1) and t1.dtype == jnp.int32, (t1.shape, t1.dtype)
    assert bool(jnp.all(t1 == r1)), (t1, r1)

    # 2) bf16, non-128-multiple vocab, single tile: packed single-pass path.
    x2 = jax.random.normal(k2, (4, 1000), dtype=jnp.bfloat16)
    t2 = jax.block_until_ready(greedy_head(x2))
    r2 = jnp.argmax(x2.astype(jnp.float32), axis=-1, keepdims=True).astype(jnp.int32)
    assert bool(jnp.all(t2 == r2)), (t2, r2)

    # 3) bf16, forced multi-tile reduction + ragged last vocab tile (in-kernel mask).
    x3 = jax.random.normal(k3, (8, 1000), dtype=jnp.bfloat16)
    t3 = jax.block_until_ready(greedy_head(x3, max_lane_tile=256))
    r3 = jnp.argmax(x3.astype(jnp.float32), axis=-1, keepdims=True).astype(jnp.int32)
    assert bool(jnp.all(t3 == r3)), (t3, r3)

    # 4) f32, two row tiles with a partial last row tile + ragged vocab tiles.
    x4 = jax.random.normal(k4, (20, 700), dtype=jnp.float32)
    t4 = jax.block_until_ready(greedy_head(x4, max_lane_tile=256))
    r4 = jnp.argmax(x4, axis=-1, keepdims=True).astype(jnp.int32)
    assert bool(jnp.all(t4 == r4)), (t4, r4)

    # 5) 3-D logits (batch, seq, vocab) as the export head sees them.
    x5 = jax.random.normal(k5, (2, 3, 640), dtype=jnp.bfloat16)
    t5 = jax.block_until_ready(greedy_head(x5))
    r5 = jnp.argmax(x5.astype(jnp.float32), axis=-1, keepdims=True).astype(jnp.int32)
    assert t5.shape == (2, 3, 1), t5.shape
    assert bool(jnp.all(t5 == r5)), (t5, r5)

    # 6) exact value tie across two vocab tiles: first occurrence must win.
    x6 = jax.random.uniform(k1, (3, 512), dtype=jnp.float32, minval=-1.0, maxval=1.0)
    x6 = x6.astype(jnp.bfloat16)
    x6 = x6.at[:, 130].set(5.0).at[:, 400].set(5.0)
    t6 = jax.block_until_ready(greedy_head(x6, max_lane_tile=128))
    assert bool(jnp.all(t6[:, 0] == 130)), t6

    print("KERNEL_OK")
</pallas_src>

<mosaic_0001>
module attributes {stable_mosaic.version = 11 : i64} {
  func.func @_greedy_kernel(%arg0: i32, %arg1: i32, %arg2: memref<2x1024xf32, #tpu.memory_space<vmem>>, %arg3: memref<2x1xi32, #tpu.memory_space<vmem>>, %arg4: memref<2x1xi32, #tpu.memory_space<vmem>>, %arg5: memref<2x1xi32, #tpu.memory_space<vmem>>) attributes {dimension_semantics = [#tpu.dimension_semantics<parallel>, #tpu.dimension_semantics<arbitrary>], iteration_bounds = array<i64: 1, 1>, scalar_prefetch = 0 : i64, scratch_operands = 2 : i64, tpu.core_type = #tpu.core_type<tc>, window_params = [{transform_indices = @transform_0, window_bounds = array<i64: 2, 1024>}, {transform_indices = @transform_1, window_bounds = array<i64: 2, 1>}]} {
    %c0_i32 = arith.constant 0 : i32
    %0 = arith.cmpi eq, %arg1, %c0_i32 : i32
    %1 = arith.extui %0 : i1 to i32
    %c0_i32_0 = arith.constant 0 : i32
    %2 = arith.cmpi ne, %1, %c0_i32_0 : i32
    scf.if %2 {
      %c-2147483648_i32_16 = arith.constant -2147483648 : i32
      %36 = vector.broadcast %c-2147483648_i32_16 : i32 to vector<2x1xi32>
      %c0_17 = arith.constant 0 : index
      %c0_18 = arith.constant 0 : index
      %37 = vector.load %arg4[%c0_17, %c0_18] : memref<2x1xi32, #tpu.memory_space<vmem>>, vector<2x1xi32>
      tpu.vector_store %arg4[%c0_17, %c0_18], %36 {strides = array<i32>} : memref<2x1xi32, #tpu.memory_space<vmem>>, vector<2x1xi32>,
      %c0_i32_19 = arith.constant 0 : i32
      %38 = vector.broadcast %c0_i32_19 : i32 to vector<2x1xi32>
      %c0_20 = arith.constant 0 : index
      %c0_21 = arith.constant 0 : index
      %39 = vector.load %arg5[%c0_20, %c0_21] : memref<2x1xi32, #tpu.memory_space<vmem>>, vector<2x1xi32>
      tpu.vector_store %arg5[%c0_20, %c0_21], %38 {strides = array<i32>} : memref<2x1xi32, #tpu.memory_space<vmem>>, vector<2x1xi32>,
    } else {
    }
    %c0 = arith.constant 0 : index
    %c0_1 = arith.constant 0 : index
    %3 = vector.load %arg2[%c0, %c0_1] : memref<2x1024xf32, #tpu.memory_space<vmem>>, vector<2x1024xf32>
    %4 = tpu.bitcast %3 : vector<2x1024xf32> -> vector<2x1024xi32>
    %5 = arith.cmpf one, %3, %3 : vector<2x1024xf32>
    %c2143289344_i32 = arith.constant 2143289344 : i32
    %6 = vector.broadcast %c2143289344_i32 : i32 to vector<2x1024xi32>
    %7 = arith.select %5, %6, %4 : vector<2x1024xi1>, vector<2x1024xi32>
    %c0_i32_2 = arith.constant 0 : i32
    %8 = vector.broadcast %c0_i32_2 : i32 to vector<2x1024xi32>
    %9 = arith.cmpi slt, %7, %8 : vector<2x1024xi32>
    %c-2147483648_i32 = arith.constant -2147483648 : i32
    %10 = vector.broadcast %c-2147483648_i32 : i32 to vector<2x1024xi32>
    %11 = arith.subi %10, %7 : vector<2x1024xi32>
    %12 = arith.select %9, %11, %7 : vector<2x1024xi1>, vector<2x1024xi32>
    %13 = tpu.iota {dimensions = array<i32: 1>} : vector<2x1024xi32>
    %cst = arith.constant dense<-2147483648> : vector<2xi32>
    %14 = vector.multi_reduction <maxsi>, %12, %cst [1] : vector<2x1024xi32> to vector<2xi32>
    %15 = vector.shape_cast %14 : vector<2xi32> to vector<2x1xi32>
    %16 = vector.broadcast %15 : vector<2x1xi32> to vector<2x1024xi32>
    %17 = arith.cmpi eq, %12, %16 : vector<2x1024xi32>
    %c2147483647_i32 = arith.constant 2147483647 : i32
    %18 = vector.broadcast %c2147483647_i32 : i32 to vector<2x1024xi32>
    %19 = arith.select %17, %13, %18 : vector<2x1024xi1>, vector<2x1024xi32>
    %cst_3 = arith.constant dense<2147483647> : vector<2xi32>
    %20 = vector.multi_reduction <minsi>, %19, %cst_3 [1] : vector<2x1024xi32> to vector<2xi32>
    %21 = vector.shape_cast %20 : vector<2xi32> to vector<2x1xi32>
    %c1024_i32 = arith.constant 1024 : i32
    %22 = arith.muli %arg1, %c1024_i32 : i32
    %23 = vector.broadcast %22 : i32 to vector<2x1xi32>
    %24 = arith.addi %21, %23 : vector<2x1xi32>
    %c0_4 = arith.constant 0 : index
    %c0_5 = arith.constant 0 : index
    %25 = vector.load %arg4[%c0_4, %c0_5] : memref<2x1xi32, #tpu.memory_space<vmem>>, vector<2x1xi32>
    %26 = arith.cmpi sgt, %15, %25 : vector<2x1xi32>
    %c0_6 = arith.constant 0 : index
    %c0_7 = arith.constant 0 : index
    %27 = vector.load %arg5[%c0_6, %c0_7] : memref<2x1xi32, #tpu.memory_space<vmem>>, vector<2x1xi32>
    %28 = arith.select %26, %24, %27 : vector<2x1xi1>, vector<2x1xi32>
    %c0_8 = arith.constant 0 : index
    %c0_9 = arith.constant 0 : index
    %29 = vector.load %arg5[%c0_8, %c0_9] : memref<2x1xi32, #tpu.memory_space<vmem>>, vector<2x1xi32>
    tpu.vector_store %arg5[%c0_8, %c0_9], %28 {strides = array<i32>} : memref<2x1xi32, #tpu.memory_space<vmem>>, vector<2x1xi32>,
    %c0_10 = arith.constant 0 : index
    %c0_11 = arith.constant 0 : index
    %30 = vector.load %arg4[%c0_10, %c0_11] : memref<2x1xi32, #tpu.memory_space<vmem>>, vector<2x1xi32>
    %31 = arith.select %26, %15, %30 : vector<2x1xi1>, vector<2x1xi32>
    %c0_12 = arith.constant 0 : index
    %c0_13 = arith.constant 0 : index
    %32 = vector.load %arg4[%c0_12, %c0_13] : memref<2x1xi32, #tpu.memory_space<vmem>>, vector<2x1xi32>
    tpu.vector_store %arg4[%c0_12, %c0_13], %31 {strides = array<i32>} : memref<2x1xi32, #tpu.memory_space<vmem>>, vector<2x1xi32>,
    %c0_i32_14 = arith.constant 0 : i32
    %33 = arith.cmpi eq, %arg1, %c0_i32_14 : i32
    %34 = arith.extui %33 : i1 to i32
    %c0_i32_15 = arith.constant 0 : i32
    %35 = arith.cmpi ne, %34, %c0_i32_15 : i32
    scf.if %35 {
      %c0_16 = arith.constant 0 : index
      %c0_17 = arith.constant 0 : index
      %36 = vector.load %arg5[%c0_16, %c0_17] : memref<2x1xi32, #tpu.memory_space<vmem>>, vector<2x1xi32>
      %c0_18 = arith.constant 0 : index
      %c0_19 = arith.constant 0 : index
      %37 = vector.load %arg3[%c0_18, %c0_19] : memref<2x1xi32, #tpu.memory_space<vmem>>, vector<2x1xi32>
      tpu.vector_store %arg3[%c0_18, %c0_19], %36 {strides = array<i32>} : memref<2x1xi32, #tpu.memory_space<vmem>>, vector<2x1xi32>,
    } else {
    }
    return
  }
  func.func @transform_0(%arg0: i32, %arg1: i32) -> (i32, i32) {
    %c0_i32 = arith.constant 0 : i32
    return %arg0, %arg1 : i32, i32
  }
  func.func @transform_1(%arg0: i32, %arg1: i32) -> (i32, i32) {
    %c0_i32 = arith.constant 0 : i32
    %c0_i32_0 = arith.constant 0 : i32
    return %arg0, %c0_i32 : i32, i32
  }
}

</mosaic_0001>

<bundles_post_ra>
// kernel: tpu_custom_call.1
= control target key start
LH: loop header
LB: loop body
LE: loop exit
PB: predicated region body
PF: predicated region fallthrough
CT: control target
= control target key end

     0   :  { %6 = vsyncpa [#allocation5], 0  ;;  %s357_s6 = smov [#allocation4]   ;;  %s462_s0 = inlined_call_operand.hbm [shape: f32[2,1024], index: 0, kind: input, shape index: {}]   ;;  %s463_s1 = inlined_call_operand.vmem [shape: s32[2,1], index: 1, kind: output, shape index: {}]  }
   0x1   :  { %s13_s7 = sshll.u32 %s357_s6, 4  ;;  %s333_s10 = scalar_lea.hbm %s462_s0, 256  ;;  %s14_s7 = int_to_ptr.vmem [resolvable:$true] %s13_s7 }
   0x2   :  { %p334_p0 = scmp.ne.s32.totalorder %s462_s0, %s333_s10  ;;  %p337_p1 = scmp.lt.u32.totalorder %s333_s10, %s462_s0 }
   0x4   :  { %p339_p2 = pnand %p337_p1, %p334_p0 }
   0x6   :  { %342 = shalt.err (!%p339_p2)
}
   0x7   :  { %s343_s15 = scalar_lea.vmem %s14_s7, 256  ;;  %p348_p4 = scmp.lt.s32.totalorder %s14_s7, %s14_s7 }
   0x8   :  { %p344_p3 = scmp.ne.s32.totalorder %s14_s7, %s343_s15  ;;  %p349_p5 = scmp.lt.s32.totalorder %s343_s15, %s343_s15 }
   0xa   :  { %p350_p6 = por %p349_p5, %p348_p4 }
   0xc   :  { %p351_p7 = pnand %p350_p6, %p344_p3 }
   0xe   :  { %354 = shalt.err (!%p351_p7)
}
   0xf   :  { %16 = dma.hbm_to_vmem [thread:$0]  %s462_s0, 256, %s14_s7, [#allocation5]  }
  0x10   :  { %355 = dma.done.wait [#allocation5], 256  }
  0x11   :  { %356 = vsyncadd [#allocation5], 4294967040  ;;  %v35_v0 = vlaneseq  ;;  %v358_v1 = vmov 1983009808   ;;  %v27_v6 = vld [vmem:[#allocation4] sm:$0xff]  ;;  %v28_v7 = vld [vmem:[#allocation4 + $0x8] sm:$0xff] }
  0x12   :  { %v33_v2 = vunpack.c.l.s4 %v358_v1  ;;  %v31_v8 = vcombine.high %v27_v6, %v27_v6  ;;  %v48_v10 = vcombine.high %v28_v7, %v28_v7  ;;  %vm65_vm0 = vcmp.ne.f32.partialorder %v27_v6, %v27_v6 }
  0x13   :  { %v385_v3 = vshrl.u32 %v35_v0, 7  ;;  %vm66_vm1 = vcmp.ne.f32.partialorder %v28_v7, %v28_v7  ;;  %vm152_vm4 = vcmask 1041408   ;;  %vm24_vm12 = vcmask 1024  }
  0x14   :  { %v34_v4 = vunpack.c.0.s8 %v33_v2  ;;  %v359_v61 = vmov 2147483648  }
  0x15   :  { %25 = vst.msk [vmem:[#allocation2] sm:$0x3] %vm24_vm12, %v359_v61 }
  0x16   :  { %v388_v5 = vsub.s32 %v34_v4, %v385_v3  ;;  %v110_v4 = vand.u32 127, %v35_v0 }
  0x18   :  { %v38_v9 = vrot.slane %v27_v6, %v388_v5  ;;  %v55_v11 = vrot.slane %v28_v7, %v388_v5  ;;  %v45_v12 = vrot.slane %v31_v8, %v388_v5  ;;  %v62_v14 = vrot.slane %v48_v10, %v388_v5 }
  0x19   :  { %v111_v6 = vadd.s32 128, %v110_v4  ;;  %v112_v7 = vadd.s32 256, %v110_v4  ;;  %v113_v8 = vadd.s32 384, %v110_v4  ;;  %v115_v10 = vadd.s32 640, %v110_v4 }
  0x1a   :  { %v46_v13 = vcombine.high %v38_v9, %v38_v9  ;;  %v63_v15 = vcombine.high %v55_v11, %v55_v11  ;;  %v47_v16 = vcombine.high %v45_v12, %v45_v12  ;;  %v64_v17 = vcombine.high %v62_v14, %v62_v14 }
  0x1c   :  { %v67_v18 = vcombine.low %v38_v9, %v46_v13  ;;  %v84_v19 = vcombine.low %v55_v11, %v63_v15  ;;  %v68_v20 = vcombine.low %v45_v12, %v47_v16  ;;  %v85_v22 = vcombine.low %v62_v14, %v64_v17 }
  0x1d   :  { %v114_v9 = vadd.s32 512, %v110_v4  ;;  %v116_v11 = vadd.s32 768, %v110_v4  ;;  %v117_v12 = vadd.s32 896, %v110_v4  ;;  %v360_v13 = vmov 269488144  }
  0x1e   :  { %v75_v21 = vrot.slane %v67_v18, %v388_v5  ;;  %v92_v23 = vrot.slane %v84_v19, %v388_v5  ;;  %v82_v24 = vrot.slane %v68_v20, %v388_v5  ;;  %v99_v25 = vrot.slane %v85_v22, %v388_v5 }
  0x1f   :  { %v190_v14 = vunpack.c.l.s4 %v360_v13  ;;  %v198_v15 = vcombine.low %v110_v4, %v111_v6  ;;  %v199_v16 = vcombine.low %v112_v7, %v113_v8  ;;  %v215_v17 = vcombine.low %v114_v9, %v115_v10 }
  0x20   :  { %v83_v26 = vcombine.low %v75_v21, %v82_v24  ;;  %v100_v27 = vcombine.low %v92_v23, %v99_v25  ;;  %v216_v18 = vcombine.low %v116_v11, %v117_v12 }
  0x21   :  { %v191_v20 = vunpack.c.0.s8 %v190_v14  ;;  %v206_v21 = vrot.slane %v198_v15, %v388_v5  ;;  %v213_v22 = vrot.slane %v199_v16, %v388_v5  ;;  %v223_v0 = vrot.slane %v215_v17, %v388_v5 }
  0x22   :  { %v101_v28 = vsel %vm65_vm0, 2143289344, %v83_v26  ;;  %v102_v29 = vsel %vm66_vm1, 2143289344, %v100_v27  ;;  %v230_v23 = vrot.slane %v216_v18, %v388_v5 }
  0x23   :  { %vm103_vm2 = vcmp.lt.s32.totalorder %v101_v28, 0  ;;  %vm104_vm3 = vcmp.lt.s32.totalorder %v102_v29, 0  ;;  %v105_v30 = vsub.s32 2147483648, %v101_v28  ;;  %v106_v31 = vsub.s32 2147483648, %v102_v29 }
  0x24   :  { %v194_v26 = vsub.s32 %v191_v20, %v385_v3 }
  0x25   :  { %v398_v32 = vsel %vm103_vm2, %v105_v30, %v101_v28  ;;  %v400_v33 = vsel %vm104_vm3, %v106_v31, %v102_v29  ;;  %v427_v28 = vld [vmem:[#allocation2] sm:$0x3]  ;;  %v214_v31 = vcombine.low %v206_v21, %v213_v22 }
  0x26   :  { %v118_v34 = vcombine.high %v398_v32, %v398_v32  ;;  %v125_v35 = vrot.slane %v398_v32, %v388_v5  ;;  %v135_v36 = vcombine.high %v400_v33, %v400_v33  ;;  %v142_v37 = vrot.slane %v400_v33, %v388_v5  ;;  %v313_v30 = vld [vmem:[#allocation2] sm:$0x3] }
  0x28   :  { %v132_v38 = vrot.slane %v118_v34, %v388_v5  ;;  %v133_v39 = vcombine.high %v125_v35, %v125_v35  ;;  %v149_v40 = vrot.slane %v135_v36, %v388_v5  ;;  %v150_v41 = vcombine.high %v142_v37, %v142_v37 }
  0x29   :  { %v153_v42 = vsel %vm152_vm4, %v125_v35, 2147483648  ;;  %v157_v43 = vsel %vm152_vm4, %v142_v37, 2147483648  ;;  %v231_v34 = vcombine.low %v223_v0, %v230_v23 }
  0x2a   :  { %v134_v44 = vcombine.high %v132_v38, %v132_v38  ;;  %v151_v45 = vcombine.high %v149_v40, %v149_v40  ;;  %v154_v46 = vsel %vm152_vm4, %v133_v39, 2147483648  ;;  %v155_v47 = vsel %vm152_vm4, %v132_v38, 2147483648 }
  0x2b   :  { %vm158_vm5 = vcmp.gt.s32.totalorder %v153_v42, %v157_v43  ;;  %v160_v48 = vsel %vm152_vm4, %v150_v41, 2147483648  ;;  %v163_v49 = vsel %vm152_vm4, %v149_v40, 2147483648 }
  0x2c   :  { %v156_v50 = vsel %vm152_vm4, %v134_v44, 2147483648  ;;  %v159_v51 = vsel %vm158_vm5, %v153_v42, %v157_v43  ;;  %vm161_vm6 = vcmp.gt.s32.totalorder %v154_v46, %v160_v48  ;;  %vm164_vm7 = vcmp.gt.s32.totalorder %v155_v47, %v163_v49 }
  0x2d   :  { %v162_v52 = vsel %vm161_vm6, %v154_v46, %v160_v48  ;;  %v165_v53 = vsel %vm164_vm7, %v155_v47, %v163_v49  ;;  %v166_v54 = vsel %vm152_vm4, %v151_v45, 2147483648 }
  0x2e   :  { %vm167_vm8 = vcmp.gt.s32.totalorder %v156_v50, %v166_v54  ;;  %vm169_vm9 = vcmp.gt.s32.totalorder %v159_v51, %v162_v52 }
  0x2f   :  { %v168_v55 = vsel %vm167_vm8, %v156_v50, %v166_v54  ;;  %v170_v56 = vsel %vm169_vm9, %v159_v51, %v162_v52 }
  0x30   :  { %vm171_vm10 = vcmp.gt.s32.totalorder %v165_v53, %v168_v55 }
  0x31   :  { %v172_v57 = vsel %vm171_vm10, %v165_v53, %v168_v55 }
  0x32   :  { %vm173_vm11 = vcmp.gt.s32.totalorder %v170_v56, %v172_v57 }
  0x33   :  { %v174_v58 = vsel %vm173_vm11, %v170_v56, %v172_v57 }
  0x34   :  { %v176_v59 = vshra.s32 %v174_v58, 16  ;;  %v175_v62 = vand.u32 65535, %v174_v58 }
  0x36   :  { %v178_v60 = vcvt.s32.f32 %v176_v59  ;;  %v177_v63 = vcvt.s32.f32 %v175_v62  ;;  %v361_v62 = vmov 0  }
  0x37   :  { %26 = vst.msk [vmem:[#allocation3] sm:$0x3] %vm24_vm12, %v361_v62 }
  0x38   :  { %179 = vmax.xlane.f32.xlu0 %v178_v60 }
  0x3e   :  { %v309_v10 = vld [vmem:[#allocation3] sm:$0x3] }
  0xc5   :  { %v180_v1 = vpop.xlane.xlu0 %179 }
  0xc6   :  { %vm181_vm13 = vcmp.eq.f32.partialorder %v178_v60, %v180_v1  ;;  %v186_v19 = vcvt.f32.s32 %v180_v1 }
  0xc7   :  { %v182_v2 = vsel %vm181_vm13, %v177_v63, -inf }
  0xc8   :  { %183 = vmax.xlane.f32.xlu0 %v182_v2  ;;  %v187_v25 = vshll.u32 %v186_v19, 16 }
 0x155   :  { %v184_v24 = vpop.xlane.xlu0 %183 }
 0x156   :  { %v185_v27 = vcvt.f32.s32 %v184_v24 }
 0x158   :  { %v429_v29 = vadd.s32 %v187_v25, %v185_v27 }
 0x15a   :  { %v195_v35 = vrot.slane %v429_v29, %v194_v26  ;;  %vm308_vm14 = vcmp.gt.s32.totalorder %v429_v29, %v427_v28 }
 0x15b   :  { %v314_v36 = vsel %vm308_vm14, %v429_v29, %v313_v30 }
 0x15c   :  { %vm196_vm15 = vcmp.eq.s32.totalorder %v398_v32, %v195_v35  ;;  %vm197_vm0 = vcmp.eq.s32.totalorder %v400_v33, %v195_v35  ;;  %315 = vst.msk [vmem:[#allocation2] sm:$0x3] %vm24_vm12, %v314_v36 }
 0x15d   :  { %v232_v3 = vsel %vm196_vm15, %v214_v31, 2147483647  ;;  %v233_v37 = vsel %vm197_vm0, %v231_v34, 2147483647 }
 0x15e   :  { %v234_v38 = vcombine.high %v232_v3, %v232_v3  ;;  %v241_v39 = vrot.slane %v232_v3, %v388_v5  ;;  %v251_v40 = vcombine.high %v233_v37, %v233_v37  ;;  %v258_v41 = vrot.slane %v233_v37, %v388_v5 }
 0x160   :  { %v248_v42 = vrot.slane %v234_v38, %v388_v5  ;;  %v249_v43 = vcombine.high %v241_v39, %v241_v39  ;;  %v265_v44 = vrot.slane %v251_v40, %v388_v5  ;;  %v266_v45 = vcombine.high %v258_v41, %v258_v41 }
 0x161   :  { %v268_v32 = vsel %vm152_vm4, %v241_v39, 2147483647  ;;  %v272_v33 = vsel %vm152_vm4, %v258_v41, 2147483647 }
 0x162   :  { %v250_v46 = vcombine.high %v248_v42, %v248_v42  ;;  %v267_v47 = vcombine.high %v265_v44, %v265_v44  ;;  %v269_v48 = vsel %vm152_vm4, %v249_v43, 2147483647  ;;  %v270_v49 = vsel %vm152_vm4, %v248_v42, 2147483647 }
 0x163   :  { %vm273_vm1 = vcmp.lt.s32.totalorder %v268_v32, %v272_v33  ;;  %v275_v50 = vsel %vm152_vm4, %v266_v45, 2147483647  ;;  %v278_v51 = vsel %vm152_vm4, %v265_v44, 2147483647 }
 0x164   :  { %v271_v52 = vsel %vm152_vm4, %v250_v46, 2147483647  ;;  %v274_v53 = vsel %vm273_vm1, %v268_v32, %v272_v33  ;;  %vm276_vm2 = vcmp.lt.s32.totalorder %v269_v48, %v275_v50  ;;  %vm279_vm3 = vcmp.lt.s32.totalorder %v270_v49, %v278_v51 }
 0x165   :  { %v277_v5 = vsel %vm276_vm2, %v269_v48, %v275_v50  ;;  %v280_v54 = vsel %vm279_vm3, %v270_v49, %v278_v51  ;;  %v281_v55 = vsel %vm152_vm4, %v267_v47, 2147483647 }
 0x166   :  { %vm282_vm5 = vcmp.lt.s32.totalorder %v271_v52, %v281_v55  ;;  %vm284_vm6 = vcmp.lt.s32.totalorder %v274_v53, %v277_v5 }
 0x167   :  { %v283_v56 = vsel %vm282_vm5, %v271_v52, %v281_v55  ;;  %v285_v57 = vsel %vm284_vm6, %v274_v53, %v277_v5 }
 0x168   :  { %vm286_vm7 = vcmp.lt.s32.totalorder %v280_v54, %v283_v56 }
 0x169   :  { %v287_v58 = vsel %vm286_vm7, %v280_v54, %v283_v56 }
 0x16a   :  { %vm288_vm8 = vcmp.lt.s32.totalorder %v285_v57, %v287_v58 }
 0x16b   :  { %v289_v59 = vsel %vm288_vm8, %v285_v57, %v287_v58 }
 0x16c   :  { %v291_v60 = vshra.s32 %v289_v59, 16  ;;  %v290_v63 = vand.u32 65535, %v289_v59 }
 0x16e   :  { %v293_v61 = vcvt.s32.f32 %v291_v60  ;;  %v292_v2 = vcvt.s32.f32 %v290_v63 }
 0x170   :  { %294 = vmin.xlane.f32.xlu1 %v293_v61 }
 0x1fd   :  { %v295_v1 = vpop.xlane.xlu1 %294 }
 0x1fe   :  { %vm296_vm9 = vcmp.eq.f32.partialorder %v293_v61, %v295_v1  ;;  %v301_v6 = vcvt.f32.s32 %v295_v1 }
 0x1ff   :  { %v297_v4 = vsel %vm296_vm9, %v292_v2, inf }
 0x200   :  { %298 = vmin.xlane.f32.xlu1 %v297_v4  ;;  %v302_v8 = vshll.u32 %v301_v6, 16 }
 0x28d   :  { %v299_v7 = vpop.xlane.xlu1 %298 }
 0x28e   :  { %v300_v9 = vcvt.f32.s32 %v299_v7 }
 0x290   :  { %v303_v11 = vadd.s32 %v302_v8, %v300_v9 }
 0x292   :  { %v310_v12 = vsel %vm308_vm14, %v303_v11, %v309_v10 }
 0x293   :  { %312 = vst.msk [vmem:[#allocation3] sm:$0x3] %vm24_vm12, %v310_v12 }
 0x29a   :  { %v319_v13 = vld [vmem:[#allocation3] sm:$0x3] }
 0x29b   :  { %320 = vst.msk [vmem:[%s463_s1] sm:$0x3] %vm24_vm12, %v319_v13 }
 0x29c   :  { %325 = vsyncpa [#allocation5], 1 }

</bundles_post_ra>
